<compile_context>
chip_gen: v7x
topology: tpu7x:2x2x1
jax: 0.10.0
libtpu: 0.0.40
codegen_flags: <defaults>
</compile_context>

<pallas_src>
import jax
import jax.numpy as jnp
from jax.experimental import pallas as pl
from jax.experimental.pallas import tpu as pltpu


# ----------------------------- kernels ------------------------------------- #

def _nw_rows_kernel(w_ref, q_ref, k_ref, v_ref, o_ref):
    # Layout A (general / large K): rows of queries on sublanes, keys on lanes.
    # w: (1,1) SMEM | q: (TN,1) | k,v: (TN,K) | o: (TN,1)
    w = w_ref[0, 0]
    q = q_ref[...].astype(jnp.float32)
    k = k_ref[...].astype(jnp.float32)
    v = v_ref[...].astype(jnp.float32)

    diff = q - k                              # broadcast == repeat_interleave
    logits = (-0.5 * w) * (diff * diff)       # -w * (q - k)^2 / 2

    m = jnp.max(logits, axis=1, keepdims=True)        # stable softmax (keys on lanes)
    e = jnp.exp(logits - m)
    num = jnp.sum(e * v, axis=1, keepdims=True)        # un-normalized weighted sum
    den = jnp.sum(e, axis=1, keepdims=True)
    o_ref[...] = (num * pl.reciprocal(den, approx=True)).astype(o_ref.dtype)


def _nw_cols_kernel(w_ref, q_ref, k_ref, v_ref, o_ref):
    # Layout B (small K): keys on sublanes, queries on lanes -> lane-dense I/O.
    # w: (1,1) SMEM | q: (1,TN) | k,v: (K,TN) | o: (1,TN)
    w = w_ref[0, 0]
    q = q_ref[...].astype(jnp.float32)
    k = k_ref[...].astype(jnp.float32)
    v = v_ref[...].astype(jnp.float32)

    diff = q - k                              # broadcast along sublanes
    logits = (-0.5 * w) * (diff * diff)

    m = jnp.max(logits, axis=0, keepdims=True)         # reduce over keys (sublanes)
    e = jnp.exp(logits - m)
    num = jnp.sum(e * v, axis=0, keepdims=True)
    den = jnp.sum(e, axis=0, keepdims=True)
    o_ref[...] = (num * pl.reciprocal(den, approx=True)).astype(o_ref.dtype)


# ----------------------------- tiling helpers ------------------------------- #

_SMALL_K_MAX = 64
_KV_DOUBLE_BUFFER_BUDGET = 12 * 1024 * 1024   # fits v5e's 16 MiB default scoped VMEM


def _choose_row_tile(n, k, itemsize):
    # keys+values dominate VMEM: 2 arrays * 2 pipeline buffers * tn * k * itemsize
    per_row = 4 * k * itemsize
    tn = _KV_DOUBLE_BUFFER_BUDGET // max(per_row, 1)
    tn = max(8, min(tn, 1024))
    if tn >= n:
        return n                               # full extent block always legal
    return (tn // 8) * 8                       # sublane-aligned


def _choose_lane_tile(n, k, itemsize):
    per_lane = 4 * k * itemsize
    tn = _KV_DOUBLE_BUFFER_BUDGET // max(per_lane, 1)
    tn = max(128, min(tn, 4096))
    if tn >= n:
        return n
    return (tn // 128) * 128                   # lane-aligned


# ----------------------------- wrapper -------------------------------------- #

def nw_kernel_regression(queries, keys, values, w, *, input_dtype=jnp.bfloat16):
    """queries: (N,), keys: (N,K), values: (N,K), w: scalar -> (N,) float32."""
    N, K = keys.shape
    w2 = jnp.asarray(w, jnp.float32).reshape(1, 1)
    itemsize = jnp.dtype(input_dtype).itemsize
    cparams = pltpu.CompilerParams(
        dimension_semantics=("parallel",),     # independent rows -> megacore on v7x
        vmem_limit_bytes=32 * 1024 * 1024,
    )

    if K <= _SMALL_K_MAX:
        # Transposed layout: N on lanes (lane-dense loads & stores), K on sublanes.
        qT = queries.reshape(1, N).astype(input_dtype)
        kT = keys.T.astype(input_dtype)        # (K, N)
        vT = values.T.astype(input_dtype)      # (K, N)
        tn = _choose_lane_tile(N, K, itemsize)
        out = pl.pallas_call(
            _nw_cols_kernel,
            out_shape=jax.ShapeDtypeStruct((1, N), jnp.float32),
            grid=(pl.cdiv(N, tn),),
            in_specs=[
                pl.BlockSpec((1, 1), lambda i: (0, 0),
                             memory_space=pltpu.MemorySpace.SMEM),
                pl.BlockSpec((1, tn), lambda i: (0, i)),
                pl.BlockSpec((K, tn), lambda i: (0, i)),
                pl.BlockSpec((K, tn), lambda i: (0, i)),
            ],
            out_specs=pl.BlockSpec((1, tn), lambda i: (0, i)),
            compiler_params=cparams,
        )(w2, qT, kT, vT)
        return out.reshape(-1)

    # General layout: row-tiled (TN, K) blocks, softmax along lanes.
    q2 = queries.reshape(N, 1).astype(input_dtype)
    k2 = keys.astype(input_dtype)
    v2 = values.astype(input_dtype)
    tn = _choose_row_tile(N, K, itemsize)
    out = pl.pallas_call(
        _nw_rows_kernel,
        out_shape=jax.ShapeDtypeStruct((N, 1), jnp.float32),
        grid=(pl.cdiv(N, tn),),
        in_specs=[
            pl.BlockSpec((1, 1), lambda i: (0, 0),
                         memory_space=pltpu.MemorySpace.SMEM),
            pl.BlockSpec((tn, 1), lambda i: (i, 0)),
            pl.BlockSpec((tn, K), lambda i: (i, 0)),
            pl.BlockSpec((tn, K), lambda i: (i, 0)),
        ],
        out_specs=pl.BlockSpec((tn, 1), lambda i: (i, 0)),
        compiler_params=cparams,
    )(w2, q2, k2, v2)
    return out.reshape(-1)


# ----------------------------- demo / check ---------------------------------- #

def f(x):
    return 2.0 * jnp.sin(x) + x ** 0.8


def _reference(q, k, v, w, in_dtype=jnp.bfloat16):
    # Pure-JAX reference of the same math, on the same bf16-compressed inputs.
    qf = q.astype(in_dtype).astype(jnp.float32)
    kf = k.astype(in_dtype).astype(jnp.float32)
    vf = v.astype(in_dtype).astype(jnp.float32)
    q_rep = jnp.repeat(qf, kf.shape[1]).reshape(-1, kf.shape[1])
    attn = jax.nn.softmax(-w * (q_rep - kf) ** 2 / 2.0, axis=1)
    return jnp.sum(attn * vf, axis=1)


if __name__ == "__main__":
    key = jax.random.PRNGKey(0)
    k_w, k_train, k_noise, k_q2, k_k2 = jax.random.split(key, 5)

    # Parameter init (matches nn.Parameter(torch.rand((1,)))).
    w = jax.random.uniform(k_w, (1,), dtype=jnp.float32)[0]

    # Shapes from the spec: n_train = 50, x_test = arange(0, 5, 0.1) -> 50 queries.
    n_train = 50
    x_train = jnp.sort(jax.random.uniform(k_train, (n_train,), dtype=jnp.float32) * 5.0)
    y_train = f(x_train) + 0.5 * jax.random.normal(k_noise, (n_train,), dtype=jnp.float32)
    x_test = jnp.arange(0, 5, 0.1, dtype=jnp.float32)
    n_test = x_test.shape[0]

    queries = x_test                                     # (50,)
    keys = jnp.tile(x_train[None, :], (n_test, 1))       # (50, 50)
    values = jnp.tile(y_train[None, :], (n_test, 1))     # (50, 50)

    # Small-K (transposed, lane-dense) path.
    out = nw_kernel_regression(queries, keys, values, w)
    jax.block_until_ready(out)
    ref = _reference(queries, keys, values, w)
    assert out.shape == (n_test,)
    assert jnp.allclose(out, ref, atol=1e-2, rtol=1e-2), (out, ref)

    # Also exercise the general row-tiled path (K > 64) at a small shape.
    q_big = jax.random.uniform(k_q2, (96,), dtype=jnp.float32) * 5.0
    k_big = jax.random.uniform(k_k2, (96, 256), dtype=jnp.float32) * 5.0
    v_big = f(k_big)
    out2 = nw_kernel_regression(q_big, k_big, v_big, w)
    jax.block_until_ready(out2)
    ref2 = _reference(q_big, k_big, v_big, w)
    assert jnp.allclose(out2, ref2, atol=1e-2, rtol=1e-2), (out2, ref2)

    print("KERNEL_OK")
</pallas_src>

<mosaic_0001>
module attributes {stable_mosaic.version = 11 : i64} {
  func.func @_nw_cols_kernel(%arg0: i32, %arg1: memref<1x1xf32, #tpu.memory_space<smem>>, %arg2: memref<1x50xbf16, #tpu.memory_space<vmem>>, %arg3: memref<50x50xbf16, #tpu.memory_space<vmem>>, %arg4: memref<50x50xbf16, #tpu.memory_space<vmem>>, %arg5: memref<1x50xf32, #tpu.memory_space<vmem>>) attributes {dimension_semantics = [#tpu.dimension_semantics<parallel>], iteration_bounds = array<i64: 1>, scalar_prefetch = 0 : i64, scratch_operands = 0 : i64, tpu.core_type = #tpu.core_type<tc>, window_params = [{transform_indices = @transform_0, window_bounds = array<i64: 1, 1>}, {transform_indices = @transform_1, window_bounds = array<i64: 1, 50>}, {transform_indices = @transform_2, window_bounds = array<i64: 50, 50>}, {transform_indices = @transform_3, window_bounds = array<i64: 50, 50>}, {transform_indices = @transform_4, window_bounds = array<i64: 1, 50>}]} {
    %c0 = arith.constant 0 : index
    %c0_0 = arith.constant 0 : index
    %0 = memref.load %arg1[%c0, %c0_0] : memref<1x1xf32, #tpu.memory_space<smem>>
    %c0_1 = arith.constant 0 : index
    %c0_2 = arith.constant 0 : index
    %1 = vector.load %arg2[%c0_1, %c0_2] : memref<1x50xbf16, #tpu.memory_space<vmem>>, vector<1x50xbf16>
    %2 = arith.extf %1 : vector<1x50xbf16> to vector<1x50xf32>
    %c0_3 = arith.constant 0 : index
    %c0_4 = arith.constant 0 : index
    %3 = vector.load %arg3[%c0_3, %c0_4] : memref<50x50xbf16, #tpu.memory_space<vmem>>, vector<50x50xbf16>
    %4 = arith.extf %3 : vector<50x50xbf16> to vector<50x50xf32>
    %c0_5 = arith.constant 0 : index
    %c0_6 = arith.constant 0 : index
    %5 = vector.load %arg4[%c0_5, %c0_6] : memref<50x50xbf16, #tpu.memory_space<vmem>>, vector<50x50xbf16>
    %6 = arith.extf %5 : vector<50x50xbf16> to vector<50x50xf32>
    %7 = vector.broadcast %2 : vector<1x50xf32> to vector<50x50xf32>
    %8 = arith.subf %7, %4 : vector<50x50xf32>
    %cst = arith.constant -5.000000e-01 : f32
    %9 = arith.mulf %cst, %0 : f32
    %10 = arith.mulf %8, %8 : vector<50x50xf32>
    %11 = vector.broadcast %9 : f32 to vector<50x50xf32>
    %12 = arith.mulf %11, %10 : vector<50x50xf32>
    %cst_7 = arith.constant dense<0xFF800000> : vector<50xf32>
    %13 = vector.multi_reduction <maximumf>, %12, %cst_7 [0] : vector<50x50xf32> to vector<50xf32>
    %14 = vector.shape_cast %13 : vector<50xf32> to vector<1x50xf32>
    %15 = vector.broadcast %14 : vector<1x50xf32> to vector<50x50xf32>
    %16 = arith.subf %12, %15 : vector<50x50xf32>
    %17 = math.exp %16 : vector<50x50xf32>
    %18 = arith.mulf %17, %6 : vector<50x50xf32>
    %cst_8 = arith.constant dense<0.000000e+00> : vector<50xf32>
    %19 = vector.multi_reduction <add>, %18, %cst_8 [0] : vector<50x50xf32> to vector<50xf32>
    %20 = vector.shape_cast %19 : vector<50xf32> to vector<1x50xf32>
    %cst_9 = arith.constant dense<0.000000e+00> : vector<50xf32>
    %21 = vector.multi_reduction <add>, %17, %cst_9 [0] : vector<50x50xf32> to vector<50xf32>
    %22 = vector.shape_cast %21 : vector<50xf32> to vector<1x50xf32>
    %23 = tpu.reciprocal %22 {approx = true} : vector<1x50xf32> -> vector<1x50xf32>
    %24 = arith.mulf %20, %23 : vector<1x50xf32>
    %c0_10 = arith.constant 0 : index
    %c0_11 = arith.constant 0 : index
    %25 = vector.load %arg5[%c0_10, %c0_11] : memref<1x50xf32, #tpu.memory_space<vmem>>, vector<1x50xf32>
    tpu.vector_store %arg5[%c0_10, %c0_11], %24 {strides = array<i32>} : memref<1x50xf32, #tpu.memory_space<vmem>>, vector<1x50xf32>,
    return
  }
  func.func @transform_0(%arg0: i32) -> (i32, i32) {
    %c0_i32 = arith.constant 0 : i32
    %c0_i32_0 = arith.constant 0 : i32
    %c0_i32_1 = arith.constant 0 : i32
    return %c0_i32, %c0_i32_0 : i32, i32
  }
  func.func @transform_1(%arg0: i32) -> (i32, i32) {
    %c0_i32 = arith.constant 0 : i32
    %c0_i32_0 = arith.constant 0 : i32
    return %c0_i32, %arg0 : i32, i32
  }
  func.func @transform_2(%arg0: i32) -> (i32, i32) {
    %c0_i32 = arith.constant 0 : i32
    %c0_i32_0 = arith.constant 0 : i32
    return %c0_i32, %arg0 : i32, i32
  }
  func.func @transform_3(%arg0: i32) -> (i32, i32) {
    %c0_i32 = arith.constant 0 : i32
    %c0_i32_0 = arith.constant 0 : i32
    return %c0_i32, %arg0 : i32, i32
  }
  func.func @transform_4(%arg0: i32) -> (i32, i32) {
    %c0_i32 = arith.constant 0 : i32
    %c0_i32_0 = arith.constant 0 : i32
    return %c0_i32, %arg0 : i32, i32
  }
}

</mosaic_0001>

<bundles_post_ra>
// kernel: tpu_custom_call.1
= control target key start
LH: loop header
LB: loop body
LE: loop exit
PB: predicated region body
PF: predicated region fallthrough
CT: control target
= control target key end

     0   :  { %10 = vsyncpa [#allocation4], 0  ;;  %s426_s0 = inlined_call_operand.<no memory space> [shape: f32[1,1], index: 0, kind: input, shape index: {}]   ;;  %s427_s1 = inlined_call_operand.vmem [shape: bf16[1,50], index: 1, kind: input, shape index: {}]   ;;  %s428_s2 = inlined_call_operand.hbm [shape: bf16[50,50], index: 2, kind: input, shape index: {}]   ;;  %s429_s3 = inlined_call_operand.hbm [shape: bf16[50,50], index: 3, kind: input, shape index: {}]   ;;  %s430_s4 = inlined_call_operand.hbm [shape: f32[1,50], index: 4, kind: output, shape index: {}]  }
   0x1   :  { %11 = vsyncpa [#allocation7], 0 }
   0x2   :  { %12 = vsyncpa [#allocation5], 0  ;;  %s333_s15 = smov [#allocation3]   ;;  %s261_s19 = scalar_lea.hbm %s428_s2, 448 }
   0x3   :  { %s22_s16 = sshll.u32 %s333_s15, 4  ;;  %p262_p0 = scmp.ne.s32.totalorder %s428_s2, %s261_s19  ;;  %s23_s16 = int_to_ptr.vmem [resolvable:$true] %s22_s16 }
   0x4   :  { %p265_p1 = scmp.lt.u32.totalorder %s261_s19, %s428_s2 }
   0x6   :  { %p267_p2 = pnand %p265_p1, %p262_p0 }
   0x8   :  { %270 = shalt.err (!%p267_p2)
}
   0x9   :  { %s271_s24 = scalar_lea.vmem %s23_s16, 448  ;;  %p276_p4 = scmp.lt.s32.totalorder %s23_s16, %s23_s16 }
   0xa   :  { %p272_p3 = scmp.ne.s32.totalorder %s23_s16, %s271_s24  ;;  %p277_p5 = scmp.lt.s32.totalorder %s271_s24, %s271_s24 }
   0xc   :  { %p278_p6 = por %p277_p5, %p276_p4 }
   0xe   :  { %p279_p7 = pnand %p278_p6, %p272_p3 }
  0x10   :  { %282 = shalt.err (!%p279_p7)
}
  0x11   :  { %s334_s25 = smov 64   ;;  %s335_s26 = smov 4  }
  0x12   :  { %28 = dma.hbm_to_vmem [thread:$0]  %s428_s2, 448, %s23_s16, [#allocation4], %s334_s25, %s334_s25, %s335_s26  }
  0x13   :  { %s336_s29 = smov [#allocation6]   ;;  %s283_s7 = scalar_lea.hbm %s429_s3, 448 }
  0x14   :  { %s34_s30 = sshll.u32 %s336_s29, 4  ;;  %p284_p8 = scmp.ne.s32.totalorder %s429_s3, %s283_s7  ;;  %s35_s30 = int_to_ptr.vmem [resolvable:$true] %s34_s30 }
  0x15   :  { %p287_p9 = scmp.lt.u32.totalorder %s283_s7, %s429_s3 }
  0x17   :  { %p289_p10 = pnand %p287_p9, %p284_p8 }
  0x19   :  { %292 = shalt.err (!%p289_p10)
}
  0x1a   :  { %s293_s12 = scalar_lea.vmem %s35_s30, 448  ;;  %p298_p12 = scmp.lt.s32.totalorder %s35_s30, %s35_s30 }
  0x1b   :  { %p294_p11 = scmp.ne.s32.totalorder %s35_s30, %s293_s12  ;;  %p299_p13 = scmp.lt.s32.totalorder %s293_s12, %s293_s12 }
  0x1d   :  { %p300_p0 = por %p299_p13, %p298_p12 }
  0x1f   :  { %p301_p1 = pnand %p300_p0, %p294_p11 }
  0x21   :  { %304 = shalt.err (!%p301_p1)
}
  0x22   :  { %40 = dma.hbm_to_vmem [thread:$0]  %s429_s3, 448, %s35_s30, [#allocation7], %s334_s25, %s334_s25, %s335_s26  }
  0x23   :  { %327 = dma.done.wait [#allocation4], 448  }
  0x24   :  { %328 = vsyncadd [#allocation4], 4294966848 }
  0x25   :  { %329 = dma.done.wait [#allocation7], 448  }
  0x26   :  { %330 = vsyncadd [#allocation7], 4294966848  ;;  %v78_v0 = vlaneseq  ;;  %v48_v2 = vld [vmem:[%s427_s1] sm:$0x1]  ;;  %v236_v4 = vld [vmem:[#allocation3 + $0x8] sm:$0xff]   ;;  %s89_s17 = smul.f32 -0.5, %s426_s0 }
  0x27   :  { %v213_v3 = vld [vmem:[#allocation3] sm:$0xff]   ;;  %v49_v6 = vunpack.c.l.bf16 %v48_v2  ;;  %v237_v7 = vld [vmem:[#allocation3 + $0x10] sm:$0xff]   ;;  %v56_v8 = vld [vmem:[#allocation3 + $0x18] sm:$0x1]  ;;  %v218_v11 = vunpack.c.l.bf16 %v236_v4  ;;  %v219_v12 = vunpack.c.h.bf16 %v236_v4  ;;  %vm105_vm0 = vcmask 408576   ;;  %s337_s0 = smov [#allocation8]  }
  0x28   :  { %v79_v1 = vshrl.u32 %v78_v0, 7  ;;  %v214_v9 = vunpack.c.l.bf16 %v213_v3  ;;  %v215_v10 = vunpack.c.h.bf16 %v213_v3  ;;  %v222_v13 = vunpack.c.l.bf16 %v237_v7  ;;  %s202_s1 = sshll.u32 %s337_s0, 4  ;;  %s203_s1 = int_to_ptr.vmem [resolvable:$true] %s202_s1 }
  0x29   :  { %v223_v14 = vunpack.c.h.bf16 %v237_v7  ;;  %v63_v15 = vunpack.c.l.bf16 %v56_v8  ;;  %v97_v24 = vstv %s89_s17  ;;  %vm114_vm1 = vcmask 402432   ;;  %v225_v8 = vld [vmem:[#allocation6] sm:$0xff]   ;;  %s305_s18 = scalar_lea.vmem %s203_s1, 16  ;;  %s309_s19 = scalar_lea.vmem %s203_s1, 32 }
  0x2a   :  { %v80_v5 = vsub.s32 0, %v79_v1  ;;  %vm194_vm2 = vcmask 401408   ;;  %p306_p2 = scmp.ne.s32.totalorder %s203_s1, %s305_s18  ;;  %p310_p3 = scmp.lt.s32.totalorder %s203_s1, %s203_s1 }
  0x2b   :  { %p311_p4 = scmp.lt.s32.totalorder %s309_s19, %s305_s18 }
  0x2c   :  { %v81_v16 = vrot.slane %v49_v6, %v80_v5 }
  0x2d   :  { %p312_p5 = por %p311_p4, %p310_p3 }
  0x2e   :  { %v82_v17 = vsub.f32 %v81_v16, %v214_v9  ;;  %v83_v18 = vsub.f32 %v81_v16, %v215_v10  ;;  %v84_v19 = vsub.f32 %v81_v16, %v218_v11  ;;  %v85_v20 = vsub.f32 %v81_v16, %v219_v12  ;;  %v238_v9 = vld [vmem:[#allocation6 + $0x8] sm:$0xff]   ;;  %v239_v12 = vld [vmem:[#allocation6 + $0x10] sm:$0xff]  }
  0x2f   :  { %v86_v21 = vsub.f32 %v81_v16, %v222_v13  ;;  %v87_v22 = vsub.f32 %v81_v16, %v223_v14  ;;  %v88_v23 = vsub.f32 %v81_v16, %v63_v15  ;;  %v226_v10 = vunpack.c.l.bf16 %v225_v8  ;;  %p313_p6 = pnand %p312_p5, %p306_p2 }
  0x30   :  { %v90_v25 = vmul.f32 %v82_v17, %v82_v17  ;;  %v91_v26 = vmul.f32 %v83_v18, %v83_v18  ;;  %v92_v27 = vmul.f32 %v84_v19, %v84_v19  ;;  %v93_v28 = vmul.f32 %v85_v20, %v85_v20  ;;  %v70_v18 = vld [vmem:[#allocation6 + $0x18] sm:$0x1] }
  0x31   :  { %v94_v29 = vmul.f32 %v86_v21, %v86_v21  ;;  %v95_v30 = vmul.f32 %v87_v22, %v87_v22  ;;  %v96_v31 = vmul.f32 %v88_v23, %v88_v23  ;;  %v227_v11 = vunpack.c.h.bf16 %v225_v8 }
  0x32   :  { %v98_v32 = vmul.f32 %v97_v24, %v90_v25  ;;  %v99_v33 = vmul.f32 %v97_v24, %v91_v26  ;;  %v100_v34 = vmul.f32 %v97_v24, %v92_v27  ;;  %v101_v35 = vmul.f32 %v97_v24, %v93_v28 }
  0x33   :  { %v102_v36 = vmul.f32 %v97_v24, %v94_v29  ;;  %v103_v37 = vmul.f32 %v97_v24, %v95_v30  ;;  %v104_v38 = vmul.f32 %v97_v24, %v96_v31  ;;  %v230_v13 = vunpack.c.l.bf16 %v238_v9 }
  0x34   :  { %v106_v39 = vsel %vm105_vm0, %v98_v32, -inf  ;;  %v107_v40 = vsel %vm105_vm0, %v99_v33, -inf  ;;  %v108_v41 = vsel %vm105_vm0, %v100_v34, -inf  ;;  %v109_v42 = vsel %vm105_vm0, %v101_v35, -inf }
  0x35   :  { %v110_v43 = vsel %vm105_vm0, %v102_v36, -inf  ;;  %v112_v44 = vsel %vm105_vm0, %v103_v37, -inf  ;;  %v115_v45 = vsel %vm114_vm1, %v104_v38, -inf  ;;  %v231_v15 = vunpack.c.h.bf16 %v238_v9 }
  0x36   :  { %v111_v46 = vmax.f32 %v106_v39, %v110_v43  ;;  %v113_v47 = vmax.f32 %v107_v40, %v112_v44  ;;  %v116_v48 = vmax.f32 %v108_v41, %v115_v45  ;;  %v234_v17 = vunpack.c.l.bf16 %v239_v12 }
  0x37   :  { %v235_v22 = vunpack.c.h.bf16 %v239_v12  ;;  %v77_v31 = vunpack.c.l.bf16 %v70_v18 }
  0x38   :  { %v117_v49 = vmax.f32 %v111_v46, %v113_v47  ;;  %v118_v50 = vmax.f32 %v116_v48, %v109_v42 }
  0x3a   :  { %v119_v51 = vmax.f32 %v117_v49, %v118_v50 }
  0x3c   :  { %v120_v52 = vrot.slane %v119_v51, 4 }
  0x3e   :  { %v121_v53 = vmax.f32 %v119_v51, %v120_v52 }
  0x40   :  { %v122_v54 = vrot.slane %v121_v53, 2 }
  0x42   :  { %v123_v55 = vmax.f32 %v121_v53, %v122_v54 }
  0x44   :  { %v124_v56 = vrot.slane %v123_v55, 1 }
  0x46   :  { %v125_v57 = vmax.f32 %v123_v55, %v124_v56 }
  0x48   :  { %v126_v58 = vsub.f32 %v98_v32, %v125_v57  ;;  %v127_v59 = vsub.f32 %v99_v33, %v125_v57  ;;  %v128_v60 = vsub.f32 %v100_v34, %v125_v57  ;;  %v129_v61 = vsub.f32 %v101_v35, %v125_v57 }
  0x49   :  { %v130_v62 = vsub.f32 %v102_v36, %v125_v57  ;;  %v131_v63 = vsub.f32 %v103_v37, %v125_v57  ;;  %v132_v3 = vsub.f32 %v104_v38, %v125_v57 }
  0x4a   :  { %v133_v0 = vmul.f32 1.442695, %v126_v58  ;;  %v135_v1 = vmul.f32 1.442695, %v127_v59  ;;  %v137_v2 = vmul.f32 1.442695, %v128_v60 }
  0x4b   :  { %v139_v4 = vmul.f32 1.442695, %v129_v61  ;;  %v141_v5 = vmul.f32 1.442695, %v130_v62  ;;  %v143_v6 = vmul.f32 1.442695, %v131_v63 }
  0x4c   :  { %245 = vpow2.f32 %v133_v0  ;;  %v145_v7 = vmul.f32 1.442695, %v132_v3 }
  0x4d   :  { %247 = vpow2.f32 %v135_v1 }
  0x4e   :  { %249 = vpow2.f32 %v137_v2 }
  0x4f   :  { %251 = vpow2.f32 %v139_v4 }
  0x50   :  { %253 = vpow2.f32 %v141_v5 }
  0x51   :  { %255 = vpow2.f32 %v143_v6 }
  0x52   :  { %257 = vpow2.f32 %v145_v7 }
  0x56   :  { %v246_v14 = vpop.eup %245 }
  0x57   :  { %v248_v16 = vpop.eup %247  ;;  %v147_v19 = vmul.f32 %v246_v14, %v226_v10  ;;  %v173_v20 = vsel %vm105_vm0, %v246_v14, 0.0 }
  0x58   :  { %v250_v21 = vpop.eup %249  ;;  %v148_v23 = vmul.f32 %v248_v16, %v227_v11  ;;  %v174_v24 = vsel %vm105_vm0, %v248_v16, 0.0 }
  0x59   :  { %v252_v25 = vpop.eup %251  ;;  %v149_v26 = vmul.f32 %v250_v21, %v230_v13  ;;  %v154_v27 = vsel %vm105_vm0, %v147_v19, 0.0  ;;  %v175_v28 = vadd.f32 %v174_v24, %v173_v20  ;;  %v176_v29 = vsel %vm105_vm0, %v250_v21, 0.0 }
  0x5a   :  { %v254_v30 = vpop.eup %253  ;;  %v150_v32 = vmul.f32 %v252_v25, %v231_v15  ;;  %v155_v33 = vsel %vm105_vm0, %v148_v23, 0.0  ;;  %v178_v34 = vsel %vm105_vm0, %v252_v25, 0.0 }
  0x5b   :  { %v256_v35 = vpop.eup %255  ;;  %v151_v36 = vmul.f32 %v254_v30, %v234_v17  ;;  %v156_v37 = vadd.f32 %v155_v33, %v154_v27  ;;  %v157_v38 = vsel %vm105_vm0, %v149_v26, 0.0  ;;  %v177_v39 = vadd.f32 %v176_v29, %v175_v28 }
  0x5c   :  { %v152_v40 = vmul.f32 %v256_v35, %v235_v22  ;;  %v159_v41 = vsel %vm105_vm0, %v150_v32, 0.0  ;;  %v180_v42 = vsel %vm105_vm0, %v254_v30, 0.0  ;;  %v258_v43 = vpop.eup %257  ;;  %v182_v48 = vsel %vm105_vm0, %v256_v35, 0.0 }
  0x5d   :  { %v158_v44 = vadd.f32 %v157_v38, %v156_v37  ;;  %v179_v45 = vadd.f32 %v178_v34, %v177_v39  ;;  %v153_v46 = vmul.f32 %v258_v43, %v77_v31  ;;  %v161_v47 = vsel %vm105_vm0, %v151_v36, 0.0 }
  0x5e   :  { %v163_v51 = vsel %vm105_vm0, %v152_v40, 0.0  ;;  %v184_v52 = vsel %vm114_vm1, %v258_v43, 0.0 }
  0x5f   :  { %v160_v49 = vadd.f32 %v159_v41, %v158_v44  ;;  %v181_v50 = vadd.f32 %v180_v42, %v179_v45  ;;  %v165_v55 = vsel %vm114_vm1, %v153_v46, 0.0 }
  0x61   :  { %v162_v53 = vadd.f32 %v161_v47, %v160_v49  ;;  %v183_v54 = vadd.f32 %v182_v48, %v181_v50 }
  0x63   :  { %v164_v56 = vadd.f32 %v163_v51, %v162_v53  ;;  %v185_v57 = vadd.f32 %v184_v52, %v183_v54 }
  0x65   :  { %v166_v58 = vadd.f32 %v165_v55, %v164_v56  ;;  %v186_v59 = vrot.slane %v185_v57, 4 }
  0x67   :  { %v167_v60 = vrot.slane %v166_v58, 4  ;;  %v187_v61 = vadd.f32 %v186_v59, %v185_v57 }
  0x69   :  { %v168_v62 = vadd.f32 %v167_v60, %v166_v58  ;;  %v188_v63 = vrot.slane %v187_v61, 2 }
  0x6b   :  { %v189_v0 = vadd.f32 %v188_v63, %v187_v61  ;;  %v169_v1 = vrot.slane %v168_v62, 2 }
  0x6d   :  { %v190_v2 = vrot.slane %v189_v0, 1  ;;  %v170_v4 = vadd.f32 %v169_v1, %v168_v62 }
  0x6f   :  { %v191_v3 = vadd.f32 %v190_v2, %v189_v0  ;;  %v171_v5 = vrot.slane %v170_v4, 1 }
  0x71   :  { %259 = vrcp.f32 %v191_v3  ;;  %v172_v6 = vadd.f32 %v171_v5, %v170_v4 }
  0x7b   :  { %v260_v7 = vpop.eup %259 }
  0x7c   :  { %v193_v8 = vmul.f32 %v260_v7, %v172_v6 }
  0x7e   :  { %195 = vst.msk [vmem:[#allocation8] sm:$0x1] %vm194_vm2, %v193_v8 }
  0x7f   :  { %316 = shalt.err (!%p313_p6)
}
  0x80   :  { %s317_s22 = scalar_lea.hbm %s430_s4, 16 }
  0x81   :  { %p318_p7 = scmp.ne.s32.totalorder %s430_s4, %s317_s22  ;;  %p321_p8 = scmp.lt.u32.totalorder %s317_s22, %s430_s4 }
  0x83   :  { %p323_p9 = pnand %p321_p8, %p318_p7 }
  0x85   :  { %326 = shalt.err (!%p323_p9)
}
  0x86   :  { %205 = dma.vmem_to_hbm [thread:$0]  %s203_s1, 16, %s430_s4, [#allocation5]  }
  0x87   :  { %331 = dma.done.wait [#allocation5], 16  }
  0x88   :  { %332 = vsyncadd [#allocation5], 4294967280 }
  0x89   :  { %209 = vsyncpa [#allocation4], 1 }
  0x8a   :  { %210 = vsyncpa [#allocation7], 1 }
  0x8b   :  { %211 = vsyncpa [#allocation5], 1 }

</bundles_post_ra>
